<compile_context>
chip_gen: v6e
topology: v6e:2x2x1
jax: 0.10.0
libtpu: 0.0.40
codegen_flags: <defaults>
</compile_context>

<pallas_src>
import numpy as np
import jax
import jax.numpy as jnp
from jax.experimental import pallas as pl
from jax.experimental.pallas import tpu as pltpu

C1 = 0.01 ** 2
C2 = 0.03 ** 2

_LANES = 128
_MAX_BLOCK_ROWS = 512              # keeps double-buffered blocks v7x-safe (64 MiB VMEM)
_BLOCK_VMEM_BUDGET = 12 * 2 ** 20  # budget for double-buffered src+tar input blocks
_UNROLL_SUBTILES = 8               # static unroll threshold for the sub-tile loop


def _round_up(x, m):
    return -(-x // m) * m


# ---------------------------------------------------------------------------
# Parameter setup (deterministic, mirrors gaussian / create_window)
# ---------------------------------------------------------------------------
def gaussian_window_2d(window_size: int, sigma: float = 1.5) -> np.ndarray:
    xs = np.arange(window_size, dtype=np.float64)
    g = np.exp(-((xs - window_size // 2) ** 2) / (2.0 * sigma ** 2)).astype(np.float32)
    g = g / g.sum()
    return np.outer(g, g).astype(np.float32)  # (K, K), shared by all channels


# ---------------------------------------------------------------------------
# Pallas kernel: per-block SSIM statistics + masked partial sum
# ---------------------------------------------------------------------------
def _make_ssim_partial_kernel(weights, block_rows, sub_rows):
    kk = len(weights)
    n_sub = block_rows // sub_rows

    def subtile_sum(src_ref, tar_ref, mask_ref, r):
        # r selects a (sub_rows, 128) sub-tile: 5 f32 accumulators stay in a
        # few vregs; taps are loaded packed (bf16) and upcast on the fly.
        mu1 = mu2 = e11 = e22 = e12 = None
        for k in range(kk):
            wk = weights[k]                      # compile-time constant
            s = src_ref[k, r, :].astype(jnp.float32)
            t = tar_ref[k, r, :].astype(jnp.float32)
            ws = wk * s                          # weight folded into one operand
            wt = wk * t                          # -> 10 VPU ops per tap
            if k == 0:
                mu1, mu2 = ws, wt
                e11, e22, e12 = ws * s, wt * t, ws * t
            else:
                mu1 = mu1 + ws
                mu2 = mu2 + wt
                e11 = e11 + ws * s
                e22 = e22 + wt * t
                e12 = e12 + ws * t

        mu1_sq = mu1 * mu1
        mu2_sq = mu2 * mu2
        mu1_mu2 = mu1 * mu2
        num = (2.0 * mu1_mu2 + C1) * (2.0 * (e12 - mu1_mu2) + C2)
        den = (mu1_sq + mu2_sq + C1) * ((e11 - mu1_sq) + (e22 - mu2_sq) + C2)
        ssim = num * pl.reciprocal(den, approx=True)   # EUP slot (~2^-12 rel err)
        ssim = ssim * mask_ref[r, :]                   # zero the padded tail
        return jnp.sum(ssim, axis=0, keepdims=True)    # (1, 128) sublane reduce

    def kernel(src_ref, tar_ref, mask_ref, o_ref):
        # src_ref / tar_ref: (K*K, block_rows, 128) tap stacks (bf16 or f32)
        # mask_ref:          (block_rows, 128)      f32 validity mask
        # o_ref:             (1, 1, 128)            f32 per-block partial sums
        if n_sub <= _UNROLL_SUBTILES:
            acc = jnp.zeros((1, _LANES), jnp.float32)
            for sub in range(n_sub):               # static unroll (LLO visibility)
                acc = acc + subtile_sum(src_ref, tar_ref, mask_ref,
                                        pl.ds(sub * sub_rows, sub_rows))
            o_ref[0] = acc
        else:
            def body(sub, acc):
                start = pl.multiple_of(sub * sub_rows, sub_rows)
                return acc + subtile_sum(src_ref, tar_ref, mask_ref,
                                         pl.ds(start, sub_rows))
            o_ref[0] = jax.lax.fori_loop(0, n_sub, body,
                                         jnp.zeros((1, _LANES), jnp.float32))

    return kernel


def _ssim_partials_call(src_stack, tar_stack, valid_mask, weights,
                        block_rows, sub_rows):
    kk, rows, lanes = src_stack.shape
    assert lanes == _LANES and rows % block_rows == 0
    num_blocks = rows // block_rows
    itemsize = src_stack.dtype.itemsize

    kernel = _make_ssim_partial_kernel(weights, block_rows, sub_rows)

    # 2 inputs x 2 pipeline buffers x block + mask (2 bufs) + output + 30% headroom.
    block_in_bytes = kk * block_rows * lanes * itemsize
    mask_block_bytes = block_rows * lanes * 4
    vmem_needed = 2 * 2 * block_in_bytes + 2 * mask_block_bytes + 2 * lanes * 4
    vmem_limit = int(min(64 * 2 ** 20, max(4 * 2 ** 20, int(vmem_needed * 1.3))))

    l_pad = rows * lanes
    cost = pl.CostEstimate(
        flops=int(l_pad * (10 * kk + 30)),
        transcendentals=int(l_pad),
        bytes_accessed=int(2 * kk * l_pad * itemsize + l_pad * 4
                           + num_blocks * lanes * 4),
    )

    return pl.pallas_call(
        kernel,
        out_shape=jax.ShapeDtypeStruct((num_blocks, 1, lanes), jnp.float32),
        grid_spec=pltpu.PrefetchScalarGridSpec(
            num_scalar_prefetch=0,
            grid=(num_blocks,),
            in_specs=[
                # NOTE: pipeline_mode=pl.Buffered(3) is an optional knob if a DMA
                # stall is still visible after the large-block change.
                pl.BlockSpec((kk, block_rows, lanes), lambda g: (0, g, 0)),
                pl.BlockSpec((kk, block_rows, lanes), lambda g: (0, g, 0)),
                pl.BlockSpec((block_rows, lanes), lambda g: (g, 0)),
            ],
            out_specs=pl.BlockSpec((1, 1, lanes), lambda g: (g, 0, 0)),
        ),
        compiler_params=pltpu.CompilerParams(
            dimension_semantics=("parallel",),   # independent blocks (megacore)
            vmem_limit_bytes=vmem_limit,
        ),
        cost_estimate=cost,
    )(src_stack, tar_stack, valid_mask)


# ---------------------------------------------------------------------------
# Glue: permutation gather on the tiny table + tap extraction via strided slices
# ---------------------------------------------------------------------------
def _build_res_index(key, pp, repeat_time):
    # TODO(synk): torch.randperm draws from torch's global RNG; reproduced
    # deterministically with jax.random.permutation instead.
    idx_list = [jnp.arange(pp, dtype=jnp.int32)]
    keys = jax.random.split(key, repeat_time)
    for i in range(1, repeat_time):
        idx_list.append(jax.random.permutation(keys[i], pp).astype(jnp.int32))
    return jnp.concatenate(idx_list)


def _build_tap_stack(patch, kernel_size, stride, pad, oh, ow):
    """(C, H, Wt) patch -> (K*K, C*oh*ow) conv-tap stack via K*K strided slices."""
    c, h, wt = patch.shape
    K, S = kernel_size, stride
    need_h = (oh - 1) * S + K
    need_w = (ow - 1) * S + K
    pad_b = max(0, need_h - (h + pad))
    pad_r = max(0, need_w - (wt + pad))
    padded = jnp.pad(patch, ((0, 0), (pad, pad_b), (pad, pad_r)))
    taps = [
        jax.lax.slice(padded, (0, kh, kw),
                      (c, kh + (oh - 1) * S + 1, kw + (ow - 1) * S + 1),
                      (1, S, S)).reshape(c * oh * ow)
        for kh in range(K) for kw in range(K)
    ]
    return jnp.stack(taps, axis=0)


def _choose_block_rows(rows, kk, itemsize, sub_rows):
    """rows is a multiple of sub_rows; returns a block size that is too."""
    if rows <= 2 * sub_rows:
        return int(rows)
    vmem_rows = _BLOCK_VMEM_BUDGET // (4 * kk * _LANES * itemsize)
    vmem_rows = max(sub_rows, (vmem_rows // sub_rows) * sub_rows)
    half = _round_up((rows + 1) // 2, sub_rows)     # aim for >= 2 grid blocks (v7x)
    return int(min(_MAX_BLOCK_ROWS, vmem_rows, half))


def s3im_forward(src_vec, tar_vec, mask, key,
                 kernel_size=4, stride=4, repeat_time=10,
                 patch_height=64, patch_width=64,
                 tap_dtype=jnp.bfloat16):
    """JAX/Pallas equivalent of S3IM.forward (size_average=True)."""
    pp = patch_height * patch_width
    src = (src_vec * mask).reshape(-1, 3).astype(jnp.float32)
    tar = (tar_vec * mask).reshape(-1, 3).astype(jnp.float32)
    n = src.shape[0]
    if n >= pp:
        src = src[:pp]
        tar = tar[:pp]
    else:
        reps = -(-pp // n)
        src = jnp.tile(src, (reps, 1))[:pp]
        tar = jnp.tile(tar, (reps, 1))[:pp]

    # Permutation gather only touches the tiny (PP, 3) RGB table.
    res_index = _build_res_index(key, pp, repeat_time)
    total_width = patch_width * repeat_time
    src_patch = jnp.take(src, res_index, axis=0).T.reshape(3, patch_height, total_width)
    tar_patch = jnp.take(tar, res_index, axis=0).T.reshape(3, patch_height, total_width)
    # bf16 tap storage halves HBM traffic (v5e/v6e are HBM-bound); all SSIM
    # statistics are accumulated in f32 inside the kernel.
    src_patch = src_patch.astype(tap_dtype)
    tar_patch = tar_patch.astype(tap_dtype)

    K, S = kernel_size, stride
    pad = (K - 1) // 2
    oh = (patch_height + 2 * pad - K) // S + 1
    ow = (total_width + 2 * pad - K) // S + 1
    kk = K * K
    L = 3 * oh * ow                                   # flattened SSIM-map size

    itemsize = np.dtype(tap_dtype).itemsize
    sub_rows = 16 if itemsize == 2 else 8             # one packed vreg per tap load
    rows = _round_up(max(-(-L // _LANES), 1), sub_rows)
    block_rows = _choose_block_rows(rows, kk, itemsize, sub_rows)
    rows = _round_up(rows, block_rows)
    l_pad = rows * _LANES
    num_blocks = rows // block_rows

    src_taps = _build_tap_stack(src_patch, K, S, pad, oh, ow)
    tar_taps = _build_tap_stack(tar_patch, K, S, pad, oh, ow)
    src_stack = jnp.pad(src_taps, ((0, 0), (0, l_pad - L))).reshape(kk, rows, _LANES)
    tar_stack = jnp.pad(tar_taps, ((0, 0), (0, l_pad - L))).reshape(kk, rows, _LANES)

    # 0/1 validity mask for the zero-padded tail (compile-time constant).
    valid_mask = jnp.asarray(
        (np.arange(l_pad) < L).astype(np.float32).reshape(rows, _LANES))

    weights = [float(w) for w in gaussian_window_2d(K, 1.5).reshape(-1)]
    partials = _ssim_partials_call(src_stack, tar_stack, valid_mask,
                                   weights, block_rows, sub_rows)
    assert partials.shape[0] == num_blocks
    ssim_mean = jnp.sum(partials) / jnp.float32(L)
    return 1.0 - ssim_mean                            # size_average=True


# ---------------------------------------------------------------------------
# Pure-JAX reference (lax depthwise conv) used only as a sanity check
# ---------------------------------------------------------------------------
def _ssim_loss_ref(src_patch, tar_patch, window2d, kernel_size, stride):
    c = src_patch.shape[1]
    w = jnp.broadcast_to(jnp.asarray(window2d)[None, None],
                         (c, 1, kernel_size, kernel_size))
    pad = (kernel_size - 1) // 2

    def conv(x):
        return jax.lax.conv_general_dilated(
            x, w, window_strides=(stride, stride),
            padding=[(pad, pad), (pad, pad)],
            dimension_numbers=("NCHW", "OIHW", "NCHW"),
            feature_group_count=c)

    mu1, mu2 = conv(src_patch), conv(tar_patch)
    s1 = conv(src_patch * src_patch) - mu1 * mu1
    s2 = conv(tar_patch * tar_patch) - mu2 * mu2
    s12 = conv(src_patch * tar_patch) - mu1 * mu2
    ssim_map = ((2 * mu1 * mu2 + C1) * (2 * s12 + C2)) / \
               ((mu1 * mu1 + mu2 * mu2 + C1) * (s1 + s2 + C2))
    return 1.0 - jnp.mean(ssim_map)


if __name__ == "__main__":
    # Small, deterministic example shapes.
    N = 300                      # number of rays/pixels (rows of the RGB vecs)
    kernel_size, stride = 4, 4
    repeat_time = 4
    patch_height, patch_width = 16, 16

    key = jax.random.PRNGKey(0)
    k_src, k_tar, k_mask, k_perm = jax.random.split(key, 4)
    src_vec = jax.random.uniform(k_src, (N, 3), dtype=jnp.float32)
    tar_vec = jax.random.uniform(k_tar, (N, 3), dtype=jnp.float32)
    mask = (jax.random.uniform(k_mask, (N, 1)) > 0.1).astype(jnp.float32)

    fwd = jax.jit(s3im_forward,
                  static_argnames=("kernel_size", "stride", "repeat_time",
                                   "patch_height", "patch_width", "tap_dtype"))
    loss = fwd(src_vec, tar_vec, mask, k_perm,
               kernel_size=kernel_size, stride=stride, repeat_time=repeat_time,
               patch_height=patch_height, patch_width=patch_width)
    loss = jax.block_until_ready(loss)

    # Sanity check against a pure-JAX reference of the same forward math.
    pp = patch_height * patch_width
    src = (src_vec * mask).reshape(-1, 3)[:pp]
    tar = (tar_vec * mask).reshape(-1, 3)[:pp]
    res_index = _build_res_index(k_perm, pp, repeat_time)
    tar_patch = tar[res_index].T.reshape(1, 3, patch_height, patch_width * repeat_time)
    src_patch = src[res_index].T.reshape(1, 3, patch_height, patch_width * repeat_time)
    window2d = gaussian_window_2d(kernel_size, 1.5)

    # (a) reference on the same bf16-quantized inputs the kernel consumes:
    #     validates the kernel math (incl. the E[x^2]-mu^2 cancellation in f32
    #     and the approx reciprocal) to the original 1e-3 tolerance.
    src_q = src_patch.astype(jnp.bfloat16).astype(jnp.float32)
    tar_q = tar_patch.astype(jnp.bfloat16).astype(jnp.float32)
    ref_bf16 = _ssim_loss_ref(src_q, tar_q, window2d, kernel_size, stride)
    # (b) full-f32 reference: guards overall forward-pass semantics (bf16 tap
    #     storage is the only approximation; pass tap_dtype=jnp.float32 to
    #     reproduce f32 exactly).
    ref_f32 = _ssim_loss_ref(src_patch, tar_patch, window2d, kernel_size, stride)

    assert jnp.isfinite(loss), "non-finite loss"
    assert abs(float(loss) - float(ref_bf16)) < 1e-3, (float(loss), float(ref_bf16))
    assert abs(float(loss) - float(ref_f32)) < 1e-2, (float(loss), float(ref_f32))
    print("KERNEL_OK")
</pallas_src>

<mosaic_0001>
module attributes {stable_mosaic.version = 11 : i64} {
  func.func @kernel(%arg0: i32, %arg1: memref<16x16x128xbf16, #tpu.memory_space<vmem>>, %arg2: memref<16x16x128xbf16, #tpu.memory_space<vmem>>, %arg3: memref<16x128xf32, #tpu.memory_space<vmem>>, %arg4: memref<1x1x128xf32, #tpu.memory_space<vmem>>) attributes {dimension_semantics = [#tpu.dimension_semantics<parallel>], iteration_bounds = array<i64: 1>, scalar_prefetch = 0 : i64, scratch_operands = 0 : i64, tpu.core_type = #tpu.core_type<tc>, window_params = [{transform_indices = @transform_0, window_bounds = array<i64: 16, 16, 128>}, {transform_indices = @transform_1, window_bounds = array<i64: 16, 16, 128>}, {transform_indices = @transform_2, window_bounds = array<i64: 16, 128>}, {transform_indices = @transform_3, window_bounds = array<i64: 1, 1, 128>}]} {
    %cst = arith.constant 0.000000e+00 : f32
    %0 = vector.broadcast %cst : f32 to vector<1x128xf32>
    %c0 = arith.constant 0 : index
    %c0_0 = arith.constant 0 : index
    %c0_1 = arith.constant 0 : index
    %1 = vector.load %arg1[%c0, %c0_0, %c0_1] : memref<16x16x128xbf16, #tpu.memory_space<vmem>>, vector<1x16x128xbf16>
    %2 = vector.shape_cast %1 : vector<1x16x128xbf16> to vector<16x128xbf16>
    %3 = arith.extf %2 : vector<16x128xbf16> to vector<16x128xf32>
    %c0_2 = arith.constant 0 : index
    %c0_3 = arith.constant 0 : index
    %c0_4 = arith.constant 0 : index
    %4 = vector.load %arg2[%c0_2, %c0_3, %c0_4] : memref<16x16x128xbf16, #tpu.memory_space<vmem>>, vector<1x16x128xbf16>
    %5 = vector.shape_cast %4 : vector<1x16x128xbf16> to vector<16x128xbf16>
    %6 = arith.extf %5 : vector<16x128xbf16> to vector<16x128xf32>
    %cst_5 = arith.constant 0.0186226591 : f32
    %7 = vector.broadcast %cst_5 : f32 to vector<16x128xf32>
    %8 = arith.mulf %7, %3 : vector<16x128xf32>
    %cst_6 = arith.constant 0.0186226591 : f32
    %9 = vector.broadcast %cst_6 : f32 to vector<16x128xf32>
    %10 = arith.mulf %9, %6 : vector<16x128xf32>
    %11 = arith.mulf %8, %3 : vector<16x128xf32>
    %12 = arith.mulf %10, %6 : vector<16x128xf32>
    %13 = arith.mulf %8, %6 : vector<16x128xf32>
    %c1 = arith.constant 1 : index
    %c0_7 = arith.constant 0 : index
    %c0_8 = arith.constant 0 : index
    %14 = vector.load %arg1[%c1, %c0_7, %c0_8] : memref<16x16x128xbf16, #tpu.memory_space<vmem>>, vector<1x16x128xbf16>
    %15 = vector.shape_cast %14 : vector<1x16x128xbf16> to vector<16x128xbf16>
    %16 = arith.extf %15 : vector<16x128xbf16> to vector<16x128xf32>
    %c1_9 = arith.constant 1 : index
    %c0_10 = arith.constant 0 : index
    %c0_11 = arith.constant 0 : index
    %17 = vector.load %arg2[%c1_9, %c0_10, %c0_11] : memref<16x16x128xbf16, #tpu.memory_space<vmem>>, vector<1x16x128xbf16>
    %18 = vector.shape_cast %17 : vector<1x16x128xbf16> to vector<16x128xbf16>
    %19 = arith.extf %18 : vector<16x128xbf16> to vector<16x128xf32>
    %cst_12 = arith.constant 0.0362719856 : f32
    %20 = vector.broadcast %cst_12 : f32 to vector<16x128xf32>
    %21 = arith.mulf %20, %16 : vector<16x128xf32>
    %cst_13 = arith.constant 0.0362719856 : f32
    %22 = vector.broadcast %cst_13 : f32 to vector<16x128xf32>
    %23 = arith.mulf %22, %19 : vector<16x128xf32>
    %24 = arith.addf %8, %21 : vector<16x128xf32>
    %25 = arith.addf %10, %23 : vector<16x128xf32>
    %26 = arith.mulf %21, %16 : vector<16x128xf32>
    %27 = arith.addf %11, %26 : vector<16x128xf32>
    %28 = arith.mulf %23, %19 : vector<16x128xf32>
    %29 = arith.addf %12, %28 : vector<16x128xf32>
    %30 = arith.mulf %21, %19 : vector<16x128xf32>
    %31 = arith.addf %13, %30 : vector<16x128xf32>
    %c2 = arith.constant 2 : index
    %c0_14 = arith.constant 0 : index
    %c0_15 = arith.constant 0 : index
    %32 = vector.load %arg1[%c2, %c0_14, %c0_15] : memref<16x16x128xbf16, #tpu.memory_space<vmem>>, vector<1x16x128xbf16>
    %33 = vector.shape_cast %32 : vector<1x16x128xbf16> to vector<16x128xbf16>
    %34 = arith.extf %33 : vector<16x128xbf16> to vector<16x128xf32>
    %c2_16 = arith.constant 2 : index
    %c0_17 = arith.constant 0 : index
    %c0_18 = arith.constant 0 : index
    %35 = vector.load %arg2[%c2_16, %c0_17, %c0_18] : memref<16x16x128xbf16, #tpu.memory_space<vmem>>, vector<1x16x128xbf16>
    %36 = vector.shape_cast %35 : vector<1x16x128xbf16> to vector<16x128xbf16>
    %37 = arith.extf %36 : vector<16x128xbf16> to vector<16x128xf32>
    %cst_19 = arith.constant 0.0452982299 : f32
    %38 = vector.broadcast %cst_19 : f32 to vector<16x128xf32>
    %39 = arith.mulf %38, %34 : vector<16x128xf32>
    %cst_20 = arith.constant 0.0452982299 : f32
    %40 = vector.broadcast %cst_20 : f32 to vector<16x128xf32>
    %41 = arith.mulf %40, %37 : vector<16x128xf32>
    %42 = arith.addf %24, %39 : vector<16x128xf32>
    %43 = arith.addf %25, %41 : vector<16x128xf32>
    %44 = arith.mulf %39, %34 : vector<16x128xf32>
    %45 = arith.addf %27, %44 : vector<16x128xf32>
    %46 = arith.mulf %41, %37 : vector<16x128xf32>
    %47 = arith.addf %29, %46 : vector<16x128xf32>
    %48 = arith.mulf %39, %37 : vector<16x128xf32>
    %49 = arith.addf %31, %48 : vector<16x128xf32>
    %c3 = arith.constant 3 : index
    %c0_21 = arith.constant 0 : index
    %c0_22 = arith.constant 0 : index
    %50 = vector.load %arg1[%c3, %c0_21, %c0_22] : memref<16x16x128xbf16, #tpu.memory_space<vmem>>, vector<1x16x128xbf16>
    %51 = vector.shape_cast %50 : vector<1x16x128xbf16> to vector<16x128xbf16>
    %52 = arith.extf %51 : vector<16x128xbf16> to vector<16x128xf32>
    %c3_23 = arith.constant 3 : index
    %c0_24 = arith.constant 0 : index
    %c0_25 = arith.constant 0 : index
    %53 = vector.load %arg2[%c3_23, %c0_24, %c0_25] : memref<16x16x128xbf16, #tpu.memory_space<vmem>>, vector<1x16x128xbf16>
    %54 = vector.shape_cast %53 : vector<1x16x128xbf16> to vector<16x128xbf16>
    %55 = arith.extf %54 : vector<16x128xbf16> to vector<16x128xf32>
    %cst_26 = arith.constant 0.0362719856 : f32
    %56 = vector.broadcast %cst_26 : f32 to vector<16x128xf32>
    %57 = arith.mulf %56, %52 : vector<16x128xf32>
    %cst_27 = arith.constant 0.0362719856 : f32
    %58 = vector.broadcast %cst_27 : f32 to vector<16x128xf32>
    %59 = arith.mulf %58, %55 : vector<16x128xf32>
    %60 = arith.addf %42, %57 : vector<16x128xf32>
    %61 = arith.addf %43, %59 : vector<16x128xf32>
    %62 = arith.mulf %57, %52 : vector<16x128xf32>
    %63 = arith.addf %45, %62 : vector<16x128xf32>
    %64 = arith.mulf %59, %55 : vector<16x128xf32>
    %65 = arith.addf %47, %64 : vector<16x128xf32>
    %66 = arith.mulf %57, %55 : vector<16x128xf32>
    %67 = arith.addf %49, %66 : vector<16x128xf32>
    %c4 = arith.constant 4 : index
    %c0_28 = arith.constant 0 : index
    %c0_29 = arith.constant 0 : index
    %68 = vector.load %arg1[%c4, %c0_28, %c0_29] : memref<16x16x128xbf16, #tpu.memory_space<vmem>>, vector<1x16x128xbf16>
    %69 = vector.shape_cast %68 : vector<1x16x128xbf16> to vector<16x128xbf16>
    %70 = arith.extf %69 : vector<16x128xbf16> to vector<16x128xf32>
    %c4_30 = arith.constant 4 : index
    %c0_31 = arith.constant 0 : index
    %c0_32 = arith.constant 0 : index
    %71 = vector.load %arg2[%c4_30, %c0_31, %c0_32] : memref<16x16x128xbf16, #tpu.memory_space<vmem>>, vector<1x16x128xbf16>
    %72 = vector.shape_cast %71 : vector<1x16x128xbf16> to vector<16x128xbf16>
    %73 = arith.extf %72 : vector<16x128xbf16> to vector<16x128xf32>
    %cst_33 = arith.constant 0.0362719856 : f32
    %74 = vector.broadcast %cst_33 : f32 to vector<16x128xf32>
    %75 = arith.mulf %74, %70 : vector<16x128xf32>
    %cst_34 = arith.constant 0.0362719856 : f32
    %76 = vector.broadcast %cst_34 : f32 to vector<16x128xf32>
    %77 = arith.mulf %76, %73 : vector<16x128xf32>
    %78 = arith.addf %60, %75 : vector<16x128xf32>
    %79 = arith.addf %61, %77 : vector<16x128xf32>
    %80 = arith.mulf %75, %70 : vector<16x128xf32>
    %81 = arith.addf %63, %80 : vector<16x128xf32>
    %82 = arith.mulf %77, %73 : vector<16x128xf32>
    %83 = arith.addf %65, %82 : vector<16x128xf32>
    %84 = arith.mulf %75, %73 : vector<16x128xf32>
    %85 = arith.addf %67, %84 : vector<16x128xf32>
    %c5 = arith.constant 5 : index
    %c0_35 = arith.constant 0 : index
    %c0_36 = arith.constant 0 : index
    %86 = vector.load %arg1[%c5, %c0_35, %c0_36] : memref<16x16x128xbf16, #tpu.memory_space<vmem>>, vector<1x16x128xbf16>
    %87 = vector.shape_cast %86 : vector<1x16x128xbf16> to vector<16x128xbf16>
    %88 = arith.extf %87 : vector<16x128xbf16> to vector<16x128xf32>
    %c5_37 = arith.constant 5 : index
    %c0_38 = arith.constant 0 : index
    %c0_39 = arith.constant 0 : index
    %89 = vector.load %arg2[%c5_37, %c0_38, %c0_39] : memref<16x16x128xbf16, #tpu.memory_space<vmem>>, vector<1x16x128xbf16>
    %90 = vector.shape_cast %89 : vector<1x16x128xbf16> to vector<16x128xbf16>
    %91 = arith.extf %90 : vector<16x128xbf16> to vector<16x128xf32>
    %cst_40 = arith.constant 0.0706481785 : f32
    %92 = vector.broadcast %cst_40 : f32 to vector<16x128xf32>
    %93 = arith.mulf %92, %88 : vector<16x128xf32>
    %cst_41 = arith.constant 0.0706481785 : f32
    %94 = vector.broadcast %cst_41 : f32 to vector<16x128xf32>
    %95 = arith.mulf %94, %91 : vector<16x128xf32>
    %96 = arith.addf %78, %93 : vector<16x128xf32>
    %97 = arith.addf %79, %95 : vector<16x128xf32>
    %98 = arith.mulf %93, %88 : vector<16x128xf32>
    %99 = arith.addf %81, %98 : vector<16x128xf32>
    %100 = arith.mulf %95, %91 : vector<16x128xf32>
    %101 = arith.addf %83, %100 : vector<16x128xf32>
    %102 = arith.mulf %93, %91 : vector<16x128xf32>
    %103 = arith.addf %85, %102 : vector<16x128xf32>
    %c6 = arith.constant 6 : index
    %c0_42 = arith.constant 0 : index
    %c0_43 = arith.constant 0 : index
    %104 = vector.load %arg1[%c6, %c0_42, %c0_43] : memref<16x16x128xbf16, #tpu.memory_space<vmem>>, vector<1x16x128xbf16>
    %105 = vector.shape_cast %104 : vector<1x16x128xbf16> to vector<16x128xbf16>
    %106 = arith.extf %105 : vector<16x128xbf16> to vector<16x128xf32>
    %c6_44 = arith.constant 6 : index
    %c0_45 = arith.constant 0 : index
    %c0_46 = arith.constant 0 : index
    %107 = vector.load %arg2[%c6_44, %c0_45, %c0_46] : memref<16x16x128xbf16, #tpu.memory_space<vmem>>, vector<1x16x128xbf16>
    %108 = vector.shape_cast %107 : vector<1x16x128xbf16> to vector<16x128xbf16>
    %109 = arith.extf %108 : vector<16x128xbf16> to vector<16x128xf32>
    %cst_47 = arith.constant 8.822890e-02 : f32
    %110 = vector.broadcast %cst_47 : f32 to vector<16x128xf32>
    %111 = arith.mulf %110, %106 : vector<16x128xf32>
    %cst_48 = arith.constant 8.822890e-02 : f32
    %112 = vector.broadcast %cst_48 : f32 to vector<16x128xf32>
    %113 = arith.mulf %112, %109 : vector<16x128xf32>
    %114 = arith.addf %96, %111 : vector<16x128xf32>
    %115 = arith.addf %97, %113 : vector<16x128xf32>
    %116 = arith.mulf %111, %106 : vector<16x128xf32>
    %117 = arith.addf %99, %116 : vector<16x128xf32>
    %118 = arith.mulf %113, %109 : vector<16x128xf32>
    %119 = arith.addf %101, %118 : vector<16x128xf32>
    %120 = arith.mulf %111, %109 : vector<16x128xf32>
    %121 = arith.addf %103, %120 : vector<16x128xf32>
    %c7 = arith.constant 7 : index
    %c0_49 = arith.constant 0 : index
    %c0_50 = arith.constant 0 : index
    %122 = vector.load %arg1[%c7, %c0_49, %c0_50] : memref<16x16x128xbf16, #tpu.memory_space<vmem>>, vector<1x16x128xbf16>
    %123 = vector.shape_cast %122 : vector<1x16x128xbf16> to vector<16x128xbf16>
    %124 = arith.extf %123 : vector<16x128xbf16> to vector<16x128xf32>
    %c7_51 = arith.constant 7 : index
    %c0_52 = arith.constant 0 : index
    %c0_53 = arith.constant 0 : index
    %125 = vector.load %arg2[%c7_51, %c0_52, %c0_53] : memref<16x16x128xbf16, #tpu.memory_space<vmem>>, vector<1x16x128xbf16>
    %126 = vector.shape_cast %125 : vector<1x16x128xbf16> to vector<16x128xbf16>
    %127 = arith.extf %126 : vector<16x128xbf16> to vector<16x128xf32>
    %cst_54 = arith.constant 0.0706481785 : f32
    %128 = vector.broadcast %cst_54 : f32 to vector<16x128xf32>
    %129 = arith.mulf %128, %124 : vector<16x128xf32>
    %cst_55 = arith.constant 0.0706481785 : f32
    %130 = vector.broadcast %cst_55 : f32 to vector<16x128xf32>
    %131 = arith.mulf %130, %127 : vector<16x128xf32>
    %132 = arith.addf %114, %129 : vector<16x128xf32>
    %133 = arith.addf %115, %131 : vector<16x128xf32>
    %134 = arith.mulf %129, %124 : vector<16x128xf32>
    %135 = arith.addf %117, %134 : vector<16x128xf32>
    %136 = arith.mulf %131, %127 : vector<16x128xf32>
    %137 = arith.addf %119, %136 : vector<16x128xf32>
    %138 = arith.mulf %129, %127 : vector<16x128xf32>
    %139 = arith.addf %121, %138 : vector<16x128xf32>
    %c8 = arith.constant 8 : index
    %c0_56 = arith.constant 0 : index
    %c0_57 = arith.constant 0 : index
    %140 = vector.load %arg1[%c8, %c0_56, %c0_57] : memref<16x16x128xbf16, #tpu.memory_space<vmem>>, vector<1x16x128xbf16>
    %141 = vector.shape_cast %140 : vector<1x16x128xbf16> to vector<16x128xbf16>
    %142 = arith.extf %141 : vector<16x128xbf16> to vector<16x128xf32>
    %c8_58 = arith.constant 8 : index
    %c0_59 = arith.constant 0 : index
    %c0_60 = arith.constant 0 : index
    %143 = vector.load %arg2[%c8_58, %c0_59, %c0_60] : memref<16x16x128xbf16, #tpu.memory_space<vmem>>, vector<1x16x128xbf16>
    %144 = vector.shape_cast %143 : vector<1x16x128xbf16> to vector<16x128xbf16>
    %145 = arith.extf %144 : vector<16x128xbf16> to vector<16x128xf32>
    %cst_61 = arith.constant 0.0452982299 : f32
    %146 = vector.broadcast %cst_61 : f32 to vector<16x128xf32>
    %147 = arith.mulf %146, %142 : vector<16x128xf32>
    %cst_62 = arith.constant 0.0452982299 : f32
    %148 = vector.broadcast %cst_62 : f32 to vector<16x128xf32>
    %149 = arith.mulf %148, %145 : vector<16x128xf32>
    %150 = arith.addf %132, %147 : vector<16x128xf32>
    %151 = arith.addf %133, %149 : vector<16x128xf32>
    %152 = arith.mulf %147, %142 : vector<16x128xf32>
    %153 = arith.addf %135, %152 : vector<16x128xf32>
    %154 = arith.mulf %149, %145 : vector<16x128xf32>
    %155 = arith.addf %137, %154 : vector<16x128xf32>
    %156 = arith.mulf %147, %145 : vector<16x128xf32>
    %157 = arith.addf %139, %156 : vector<16x128xf32>
    %c9 = arith.constant 9 : index
    %c0_63 = arith.constant 0 : index
    %c0_64 = arith.constant 0 : index
    %158 = vector.load %arg1[%c9, %c0_63, %c0_64] : memref<16x16x128xbf16, #tpu.memory_space<vmem>>, vector<1x16x128xbf16>
    %159 = vector.shape_cast %158 : vector<1x16x128xbf16> to vector<16x128xbf16>
    %160 = arith.extf %159 : vector<16x128xbf16> to vector<16x128xf32>
    %c9_65 = arith.constant 9 : index
    %c0_66 = arith.constant 0 : index
    %c0_67 = arith.constant 0 : index
    %161 = vector.load %arg2[%c9_65, %c0_66, %c0_67] : memref<16x16x128xbf16, #tpu.memory_space<vmem>>, vector<1x16x128xbf16>
    %162 = vector.shape_cast %161 : vector<1x16x128xbf16> to vector<16x128xbf16>
    %163 = arith.extf %162 : vector<16x128xbf16> to vector<16x128xf32>
    %cst_68 = arith.constant 8.822890e-02 : f32
    %164 = vector.broadcast %cst_68 : f32 to vector<16x128xf32>
    %165 = arith.mulf %164, %160 : vector<16x128xf32>
    %cst_69 = arith.constant 8.822890e-02 : f32
    %166 = vector.broadcast %cst_69 : f32 to vector<16x128xf32>
    %167 = arith.mulf %166, %163 : vector<16x128xf32>
    %168 = arith.addf %150, %165 : vector<16x128xf32>
    %169 = arith.addf %151, %167 : vector<16x128xf32>
    %170 = arith.mulf %165, %160 : vector<16x128xf32>
    %171 = arith.addf %153, %170 : vector<16x128xf32>
    %172 = arith.mulf %167, %163 : vector<16x128xf32>
    %173 = arith.addf %155, %172 : vector<16x128xf32>
    %174 = arith.mulf %165, %163 : vector<16x128xf32>
    %175 = arith.addf %157, %174 : vector<16x128xf32>
    %c10 = arith.constant 10 : index
    %c0_70 = arith.constant 0 : index
    %c0_71 = arith.constant 0 : index
    %176 = vector.load %arg1[%c10, %c0_70, %c0_71] : memref<16x16x128xbf16, #tpu.memory_space<vmem>>, vector<1x16x128xbf16>
    %177 = vector.shape_cast %176 : vector<1x16x128xbf16> to vector<16x128xbf16>
    %178 = arith.extf %177 : vector<16x128xbf16> to vector<16x128xf32>
    %c10_72 = arith.constant 10 : index
    %c0_73 = arith.constant 0 : index
    %c0_74 = arith.constant 0 : index
    %179 = vector.load %arg2[%c10_72, %c0_73, %c0_74] : memref<16x16x128xbf16, #tpu.memory_space<vmem>>, vector<1x16x128xbf16>
    %180 = vector.shape_cast %179 : vector<1x16x128xbf16> to vector<16x128xbf16>
    %181 = arith.extf %180 : vector<16x128xbf16> to vector<16x128xf32>
    %cst_75 = arith.constant 0.110184573 : f32
    %182 = vector.broadcast %cst_75 : f32 to vector<16x128xf32>
    %183 = arith.mulf %182, %178 : vector<16x128xf32>
    %cst_76 = arith.constant 0.110184573 : f32
    %184 = vector.broadcast %cst_76 : f32 to vector<16x128xf32>
    %185 = arith.mulf %184, %181 : vector<16x128xf32>
    %186 = arith.addf %168, %183 : vector<16x128xf32>
    %187 = arith.addf %169, %185 : vector<16x128xf32>
    %188 = arith.mulf %183, %178 : vector<16x128xf32>
    %189 = arith.addf %171, %188 : vector<16x128xf32>
    %190 = arith.mulf %185, %181 : vector<16x128xf32>
    %191 = arith.addf %173, %190 : vector<16x128xf32>
    %192 = arith.mulf %183, %181 : vector<16x128xf32>
    %193 = arith.addf %175, %192 : vector<16x128xf32>
    %c11 = arith.constant 11 : index
    %c0_77 = arith.constant 0 : index
    %c0_78 = arith.constant 0 : index
    %194 = vector.load %arg1[%c11, %c0_77, %c0_78] : memref<16x16x128xbf16, #tpu.memory_space<vmem>>, vector<1x16x128xbf16>
    %195 = vector.shape_cast %194 : vector<1x16x128xbf16> to vector<16x128xbf16>
    %196 = arith.extf %195 : vector<16x128xbf16> to vector<16x128xf32>
    %c11_79 = arith.constant 11 : index
    %c0_80 = arith.constant 0 : index
    %c0_81 = arith.constant 0 : index
    %197 = vector.load %arg2[%c11_79, %c0_80, %c0_81] : memref<16x16x128xbf16, #tpu.memory_space<vmem>>, vector<1x16x128xbf16>
    %198 = vector.shape_cast %197 : vector<1x16x128xbf16> to vector<16x128xbf16>
    %199 = arith.extf %198 : vector<16x128xbf16> to vector<16x128xf32>
    %cst_82 = arith.constant 8.822890e-02 : f32
    %200 = vector.broadcast %cst_82 : f32 to vector<16x128xf32>
    %201 = arith.mulf %200, %196 : vector<16x128xf32>
    %cst_83 = arith.constant 8.822890e-02 : f32
    %202 = vector.broadcast %cst_83 : f32 to vector<16x128xf32>
    %203 = arith.mulf %202, %199 : vector<16x128xf32>
    %204 = arith.addf %186, %201 : vector<16x128xf32>
    %205 = arith.addf %187, %203 : vector<16x128xf32>
    %206 = arith.mulf %201, %196 : vector<16x128xf32>
    %207 = arith.addf %189, %206 : vector<16x128xf32>
    %208 = arith.mulf %203, %199 : vector<16x128xf32>
    %209 = arith.addf %191, %208 : vector<16x128xf32>
    %210 = arith.mulf %201, %199 : vector<16x128xf32>
    %211 = arith.addf %193, %210 : vector<16x128xf32>
    %c12 = arith.constant 12 : index
    %c0_84 = arith.constant 0 : index
    %c0_85 = arith.constant 0 : index
    %212 = vector.load %arg1[%c12, %c0_84, %c0_85] : memref<16x16x128xbf16, #tpu.memory_space<vmem>>, vector<1x16x128xbf16>
    %213 = vector.shape_cast %212 : vector<1x16x128xbf16> to vector<16x128xbf16>
    %214 = arith.extf %213 : vector<16x128xbf16> to vector<16x128xf32>
    %c12_86 = arith.constant 12 : index
    %c0_87 = arith.constant 0 : index
    %c0_88 = arith.constant 0 : index
    %215 = vector.load %arg2[%c12_86, %c0_87, %c0_88] : memref<16x16x128xbf16, #tpu.memory_space<vmem>>, vector<1x16x128xbf16>
    %216 = vector.shape_cast %215 : vector<1x16x128xbf16> to vector<16x128xbf16>
    %217 = arith.extf %216 : vector<16x128xbf16> to vector<16x128xf32>
    %cst_89 = arith.constant 0.0362719856 : f32
    %218 = vector.broadcast %cst_89 : f32 to vector<16x128xf32>
    %219 = arith.mulf %218, %214 : vector<16x128xf32>
    %cst_90 = arith.constant 0.0362719856 : f32
    %220 = vector.broadcast %cst_90 : f32 to vector<16x128xf32>
    %221 = arith.mulf %220, %217 : vector<16x128xf32>
    %222 = arith.addf %204, %219 : vector<16x128xf32>
    %223 = arith.addf %205, %221 : vector<16x128xf32>
    %224 = arith.mulf %219, %214 : vector<16x128xf32>
    %225 = arith.addf %207, %224 : vector<16x128xf32>
    %226 = arith.mulf %221, %217 : vector<16x128xf32>
    %227 = arith.addf %209, %226 : vector<16x128xf32>
    %228 = arith.mulf %219, %217 : vector<16x128xf32>
    %229 = arith.addf %211, %228 : vector<16x128xf32>
    %c13 = arith.constant 13 : index
    %c0_91 = arith.constant 0 : index
    %c0_92 = arith.constant 0 : index
    %230 = vector.load %arg1[%c13, %c0_91, %c0_92] : memref<16x16x128xbf16, #tpu.memory_space<vmem>>, vector<1x16x128xbf16>
    %231 = vector.shape_cast %230 : vector<1x16x128xbf16> to vector<16x128xbf16>
    %232 = arith.extf %231 : vector<16x128xbf16> to vector<16x128xf32>
    %c13_93 = arith.constant 13 : index
    %c0_94 = arith.constant 0 : index
    %c0_95 = arith.constant 0 : index
    %233 = vector.load %arg2[%c13_93, %c0_94, %c0_95] : memref<16x16x128xbf16, #tpu.memory_space<vmem>>, vector<1x16x128xbf16>
    %234 = vector.shape_cast %233 : vector<1x16x128xbf16> to vector<16x128xbf16>
    %235 = arith.extf %234 : vector<16x128xbf16> to vector<16x128xf32>
    %cst_96 = arith.constant 0.0706481785 : f32
    %236 = vector.broadcast %cst_96 : f32 to vector<16x128xf32>
    %237 = arith.mulf %236, %232 : vector<16x128xf32>
    %cst_97 = arith.constant 0.0706481785 : f32
    %238 = vector.broadcast %cst_97 : f32 to vector<16x128xf32>
    %239 = arith.mulf %238, %235 : vector<16x128xf32>
    %240 = arith.addf %222, %237 : vector<16x128xf32>
    %241 = arith.addf %223, %239 : vector<16x128xf32>
    %242 = arith.mulf %237, %232 : vector<16x128xf32>
    %243 = arith.addf %225, %242 : vector<16x128xf32>
    %244 = arith.mulf %239, %235 : vector<16x128xf32>
    %245 = arith.addf %227, %244 : vector<16x128xf32>
    %246 = arith.mulf %237, %235 : vector<16x128xf32>
    %247 = arith.addf %229, %246 : vector<16x128xf32>
    %c14 = arith.constant 14 : index
    %c0_98 = arith.constant 0 : index
    %c0_99 = arith.constant 0 : index
    %248 = vector.load %arg1[%c14, %c0_98, %c0_99] : memref<16x16x128xbf16, #tpu.memory_space<vmem>>, vector<1x16x128xbf16>
    %249 = vector.shape_cast %248 : vector<1x16x128xbf16> to vector<16x128xbf16>
    %250 = arith.extf %249 : vector<16x128xbf16> to vector<16x128xf32>
    %c14_100 = arith.constant 14 : index
    %c0_101 = arith.constant 0 : index
    %c0_102 = arith.constant 0 : index
    %251 = vector.load %arg2[%c14_100, %c0_101, %c0_102] : memref<16x16x128xbf16, #tpu.memory_space<vmem>>, vector<1x16x128xbf16>
    %252 = vector.shape_cast %251 : vector<1x16x128xbf16> to vector<16x128xbf16>
    %253 = arith.extf %252 : vector<16x128xbf16> to vector<16x128xf32>
    %cst_103 = arith.constant 8.822890e-02 : f32
    %254 = vector.broadcast %cst_103 : f32 to vector<16x128xf32>
    %255 = arith.mulf %254, %250 : vector<16x128xf32>
    %cst_104 = arith.constant 8.822890e-02 : f32
    %256 = vector.broadcast %cst_104 : f32 to vector<16x128xf32>
    %257 = arith.mulf %256, %253 : vector<16x128xf32>
    %258 = arith.addf %240, %255 : vector<16x128xf32>
    %259 = arith.addf %241, %257 : vector<16x128xf32>
    %260 = arith.mulf %255, %250 : vector<16x128xf32>
    %261 = arith.addf %243, %260 : vector<16x128xf32>
    %262 = arith.mulf %257, %253 : vector<16x128xf32>
    %263 = arith.addf %245, %262 : vector<16x128xf32>
    %264 = arith.mulf %255, %253 : vector<16x128xf32>
    %265 = arith.addf %247, %264 : vector<16x128xf32>
    %c15 = arith.constant 15 : index
    %c0_105 = arith.constant 0 : index
    %c0_106 = arith.constant 0 : index
    %266 = vector.load %arg1[%c15, %c0_105, %c0_106] : memref<16x16x128xbf16, #tpu.memory_space<vmem>>, vector<1x16x128xbf16>
    %267 = vector.shape_cast %266 : vector<1x16x128xbf16> to vector<16x128xbf16>
    %268 = arith.extf %267 : vector<16x128xbf16> to vector<16x128xf32>
    %c15_107 = arith.constant 15 : index
    %c0_108 = arith.constant 0 : index
    %c0_109 = arith.constant 0 : index
    %269 = vector.load %arg2[%c15_107, %c0_108, %c0_109] : memref<16x16x128xbf16, #tpu.memory_space<vmem>>, vector<1x16x128xbf16>
    %270 = vector.shape_cast %269 : vector<1x16x128xbf16> to vector<16x128xbf16>
    %271 = arith.extf %270 : vector<16x128xbf16> to vector<16x128xf32>
    %cst_110 = arith.constant 0.0706481785 : f32
    %272 = vector.broadcast %cst_110 : f32 to vector<16x128xf32>
    %273 = arith.mulf %272, %268 : vector<16x128xf32>
    %cst_111 = arith.constant 0.0706481785 : f32
    %274 = vector.broadcast %cst_111 : f32 to vector<16x128xf32>
    %275 = arith.mulf %274, %271 : vector<16x128xf32>
    %276 = arith.addf %258, %273 : vector<16x128xf32>
    %277 = arith.addf %259, %275 : vector<16x128xf32>
    %278 = arith.mulf %273, %268 : vector<16x128xf32>
    %279 = arith.addf %261, %278 : vector<16x128xf32>
    %280 = arith.mulf %275, %271 : vector<16x128xf32>
    %281 = arith.addf %263, %280 : vector<16x128xf32>
    %282 = arith.mulf %273, %271 : vector<16x128xf32>
    %283 = arith.addf %265, %282 : vector<16x128xf32>
    %284 = arith.mulf %276, %276 : vector<16x128xf32>
    %285 = arith.mulf %277, %277 : vector<16x128xf32>
    %286 = arith.mulf %276, %277 : vector<16x128xf32>
    %cst_112 = arith.constant 2.000000e+00 : f32
    %287 = vector.broadcast %cst_112 : f32 to vector<16x128xf32>
    %288 = arith.mulf %287, %286 : vector<16x128xf32>
    %cst_113 = arith.constant 9.99999974E-5 : f32
    %289 = vector.broadcast %cst_113 : f32 to vector<16x128xf32>
    %290 = arith.addf %288, %289 : vector<16x128xf32>
    %291 = arith.subf %283, %286 : vector<16x128xf32>
    %cst_114 = arith.constant 2.000000e+00 : f32
    %292 = vector.broadcast %cst_114 : f32 to vector<16x128xf32>
    %293 = arith.mulf %292, %291 : vector<16x128xf32>
    %cst_115 = arith.constant 8.99999984E-4 : f32
    %294 = vector.broadcast %cst_115 : f32 to vector<16x128xf32>
    %295 = arith.addf %293, %294 : vector<16x128xf32>
    %296 = arith.mulf %290, %295 : vector<16x128xf32>
    %297 = arith.addf %284, %285 : vector<16x128xf32>
    %cst_116 = arith.constant 9.99999974E-5 : f32
    %298 = vector.broadcast %cst_116 : f32 to vector<16x128xf32>
    %299 = arith.addf %297, %298 : vector<16x128xf32>
    %300 = arith.subf %279, %284 : vector<16x128xf32>
    %301 = arith.subf %281, %285 : vector<16x128xf32>
    %302 = arith.addf %300, %301 : vector<16x128xf32>
    %cst_117 = arith.constant 8.99999984E-4 : f32
    %303 = vector.broadcast %cst_117 : f32 to vector<16x128xf32>
    %304 = arith.addf %302, %303 : vector<16x128xf32>
    %305 = arith.mulf %299, %304 : vector<16x128xf32>
    %306 = tpu.reciprocal %305 {approx = true} : vector<16x128xf32> -> vector<16x128xf32>
    %307 = arith.mulf %296, %306 : vector<16x128xf32>
    %c0_118 = arith.constant 0 : index
    %c0_119 = arith.constant 0 : index
    %308 = vector.load %arg3[%c0_118, %c0_119] : memref<16x128xf32, #tpu.memory_space<vmem>>, vector<16x128xf32>
    %309 = arith.mulf %307, %308 : vector<16x128xf32>
    %cst_120 = arith.constant dense<0.000000e+00> : vector<128xf32>
    %310 = vector.multi_reduction <add>, %309, %cst_120 [0] : vector<16x128xf32> to vector<128xf32>
    %311 = vector.shape_cast %310 : vector<128xf32> to vector<1x128xf32>
    %312 = arith.addf %0, %311 : vector<1x128xf32>
    %c0_121 = arith.constant 0 : index
    %c0_122 = arith.constant 0 : index
    %c0_123 = arith.constant 0 : index
    %313 = vector.load %arg4[%c0_121, %c0_122, %c0_123] : memref<1x1x128xf32, #tpu.memory_space<vmem>>, vector<1x1x128xf32>
    %314 = vector.shape_cast %313 : vector<1x1x128xf32> to vector<1x128xf32>
    %315 = vector.shape_cast %312 : vector<1x128xf32> to vector<1x1x128xf32>
    tpu.vector_store %arg4[%c0_121, %c0_122, %c0_123], %315 {strides = array<i32>} : memref<1x1x128xf32, #tpu.memory_space<vmem>>, vector<1x1x128xf32>,
    return
  }
  func.func @transform_0(%arg0: i32) -> (i32, i32, i32) {
    %c0_i32 = arith.constant 0 : i32
    %c0_i32_0 = arith.constant 0 : i32
    %c0_i32_1 = arith.constant 0 : i32
    return %c0_i32, %arg0, %c0_i32_0 : i32, i32, i32
  }
  func.func @transform_1(%arg0: i32) -> (i32, i32, i32) {
    %c0_i32 = arith.constant 0 : i32
    %c0_i32_0 = arith.constant 0 : i32
    %c0_i32_1 = arith.constant 0 : i32
    return %c0_i32, %arg0, %c0_i32_0 : i32, i32, i32
  }
  func.func @transform_2(%arg0: i32) -> (i32, i32) {
    %c0_i32 = arith.constant 0 : i32
    %c0_i32_0 = arith.constant 0 : i32
    return %arg0, %c0_i32 : i32, i32
  }
  func.func @transform_3(%arg0: i32) -> (i32, i32, i32) {
    %c0_i32 = arith.constant 0 : i32
    %c0_i32_0 = arith.constant 0 : i32
    %c0_i32_1 = arith.constant 0 : i32
    return %arg0, %c0_i32, %c0_i32_0 : i32, i32, i32
  }
}

</mosaic_0001>

<bundles_post_ra>
// kernel: s3im_forward.1
= control target key start
LH: loop header
LB: loop body
LE: loop exit
PB: predicated region body
PF: predicated region fallthrough
CT: control target
= control target key end

     0   :  { %s882_s0 = inlined_call_operand.vmem [shape: bf16[16,16,128], index: 0, kind: input, shape index: {}]   ;;  %s883_s1 = inlined_call_operand.vmem [shape: bf16[16,16,128], index: 1, kind: input, shape index: {}]   ;;  %s884_s2 = inlined_call_operand.vmem [shape: f32[16,128], index: 2, kind: input, shape index: {}]   ;;  %s885_s3 = inlined_call_operand.vmem [shape: f32[1,1,128], index: 3, kind: output, shape index: {}]  }
   0x1   :  { %v596_v0 = vld [vmem:[%s882_s0] sm:$0xff]   ;;  %v723_v2 = vld [vmem:[%s882_s0 + $0x8] sm:$0xff]   ;;  %v725_v12 = vld [vmem:[%s882_s0 + $0x10] sm:$0xff]  }
   0x2   :  { %v600_v1 = vld [vmem:[%s883_s1] sm:$0xff]   ;;  %v597_v3 = vunpack.c.l.bf16 %v596_v0  ;;  %v598_v4 = vunpack.c.h.bf16 %v596_v0  ;;  %v724_v7 = vld [vmem:[%s883_s1 + $0x8] sm:$0xff]   ;;  %v605_v8 = vunpack.c.l.bf16 %v723_v2  ;;  %v606_v9 = vunpack.c.h.bf16 %v723_v2  ;;  %v726_v29 = vld [vmem:[%s883_s1 + $0x10] sm:$0xff]  }
   0x3   :  { %v601_v5 = vunpack.c.l.bf16 %v600_v1  ;;  %v602_v6 = vunpack.c.h.bf16 %v600_v1  ;;  %v609_v10 = vunpack.c.l.bf16 %v724_v7  ;;  %v610_v11 = vunpack.c.h.bf16 %v724_v7  ;;  %v727_v42 = vld [vmem:[%s882_s0 + $0x18] sm:$0xff]  }
   0x4   :  { %v22_v13 = vmul.f32 0.01862266, %v597_v3  ;;  %v23_v14 = vmul.f32 0.01862266, %v598_v4  ;;  %v42_v17 = vmul.f32 0.036271986, %v605_v8  ;;  %v613_v19 = vunpack.c.l.bf16 %v725_v12 }
   0x5   :  { %v24_v15 = vmul.f32 0.01862266, %v601_v5  ;;  %v25_v16 = vmul.f32 0.01862266, %v602_v6  ;;  %v43_v18 = vmul.f32 0.036271986, %v606_v9  ;;  %v614_v20 = vunpack.c.h.bf16 %v725_v12 }
   0x6   :  { %v26_v21 = vmul.f32 %v597_v3, %v22_v13  ;;  %v27_v22 = vmul.f32 %v598_v4, %v23_v14  ;;  %v44_v23 = vmul.f32 0.036271986, %v609_v10  ;;  %v45_v24 = vmul.f32 0.036271986, %v610_v11  ;;  %v728_v55 = vld [vmem:[%s883_s1 + $0x18] sm:$0xff]   ;;  %v729_v4 = vld [vmem:[%s882_s0 + $0x20] sm:$0xff]  }
   0x7   :  { %v28_v25 = vmul.f32 %v601_v5, %v24_v15  ;;  %v30_v26 = vmul.f32 %v601_v5, %v22_v13  ;;  %v50_v27 = vmul.f32 %v605_v8, %v42_v17  ;;  %v51_v28 = vmul.f32 %v606_v9, %v43_v18 }
   0x8   :  { %v29_v30 = vmul.f32 %v602_v6, %v25_v16  ;;  %v31_v31 = vmul.f32 %v602_v6, %v23_v14  ;;  %v54_v32 = vmul.f32 %v609_v10, %v44_v23  ;;  %v55_v33 = vmul.f32 %v610_v11, %v45_v24 }
   0x9   :  { %v46_v34 = vadd.f32 %v42_v17, %v22_v13  ;;  %v47_v35 = vadd.f32 %v43_v18, %v23_v14  ;;  %v48_v36 = vadd.f32 %v44_v23, %v24_v15  ;;  %v49_v37 = vadd.f32 %v45_v24, %v25_v16 }
   0xa   :  { %v58_v38 = vmul.f32 %v609_v10, %v42_v17  ;;  %v59_v39 = vmul.f32 %v610_v11, %v43_v18  ;;  %v617_v40 = vunpack.c.l.bf16 %v726_v29  ;;  %v618_v41 = vunpack.c.h.bf16 %v726_v29  ;;  %v730_v17 = vld [vmem:[%s883_s1 + $0x20] sm:$0xff]  }
   0xb   :  { %v52_v43 = vadd.f32 %v50_v27, %v26_v21  ;;  %v53_v44 = vadd.f32 %v51_v28, %v27_v22  ;;  %v72_v45 = vmul.f32 0.04529823, %v613_v19  ;;  %v73_v46 = vmul.f32 0.04529823, %v614_v20 }
   0xc   :  { %v56_v47 = vadd.f32 %v54_v32, %v28_v25  ;;  %v57_v48 = vadd.f32 %v55_v33, %v29_v30  ;;  %v74_v49 = vmul.f32 0.04529823, %v617_v40  ;;  %v75_v50 = vmul.f32 0.04529823, %v618_v41  ;;  %v731_v30 = vld [vmem:[%s882_s0 + $0x28] sm:$0xff]  }
   0xd   :  { %v80_v51 = vmul.f32 %v613_v19, %v72_v45  ;;  %v81_v52 = vmul.f32 %v614_v20, %v73_v46  ;;  %v621_v53 = vunpack.c.l.bf16 %v727_v42  ;;  %v622_v54 = vunpack.c.h.bf16 %v727_v42 }
   0xe   :  { %v60_v56 = vadd.f32 %v58_v38, %v30_v26  ;;  %v61_v57 = vadd.f32 %v59_v39, %v31_v31  ;;  %v84_v58 = vmul.f32 %v617_v40, %v74_v49  ;;  %v85_v59 = vmul.f32 %v618_v41, %v75_v50 }
   0xf   :  { %v76_v60 = vadd.f32 %v72_v45, %v46_v34  ;;  %v77_v61 = vadd.f32 %v73_v46, %v47_v35  ;;  %v78_v62 = vadd.f32 %v74_v49, %v48_v36  ;;  %v79_v63 = vadd.f32 %v75_v50, %v49_v37 }
  0x10   :  { %v88_v0 = vmul.f32 %v617_v40, %v72_v45  ;;  %v89_v1 = vmul.f32 %v618_v41, %v73_v46  ;;  %v625_v2 = vunpack.c.l.bf16 %v728_v55  ;;  %v626_v3 = vunpack.c.h.bf16 %v728_v55 }
  0x11   :  { %v82_v5 = vadd.f32 %v80_v51, %v52_v43  ;;  %v83_v6 = vadd.f32 %v81_v52, %v53_v44  ;;  %v102_v7 = vmul.f32 0.036271986, %v621_v53  ;;  %v103_v8 = vmul.f32 0.036271986, %v622_v54  ;;  %v732_v43 = vld [vmem:[%s883_s1 + $0x28] sm:$0xff]  }
  0x12   :  { %v86_v9 = vadd.f32 %v84_v58, %v56_v47  ;;  %v87_v10 = vadd.f32 %v85_v59, %v57_v48  ;;  %v104_v11 = vmul.f32 0.036271986, %v625_v2  ;;  %v105_v12 = vmul.f32 0.036271986, %v626_v3 }
  0x13   :  { %v110_v13 = vmul.f32 %v621_v53, %v102_v7  ;;  %v111_v14 = vmul.f32 %v622_v54, %v103_v8  ;;  %v629_v15 = vunpack.c.l.bf16 %v729_v4  ;;  %v630_v16 = vunpack.c.h.bf16 %v729_v4 }
  0x14   :  { %v90_v18 = vadd.f32 %v88_v0, %v60_v56  ;;  %v91_v19 = vadd.f32 %v89_v1, %v61_v57  ;;  %v114_v20 = vmul.f32 %v625_v2, %v104_v11  ;;  %v115_v21 = vmul.f32 %v626_v3, %v105_v12  ;;  %v733_v56 = vld [vmem:[%s882_s0 + $0x30] sm:$0xff]  }
  0x15   :  { %v106_v22 = vadd.f32 %v102_v7, %v76_v60  ;;  %v107_v23 = vadd.f32 %v103_v8, %v77_v61  ;;  %v108_v24 = vadd.f32 %v104_v11, %v78_v62  ;;  %v109_v25 = vadd.f32 %v105_v12, %v79_v63 }
  0x16   :  { %v118_v26 = vmul.f32 %v625_v2, %v102_v7  ;;  %v119_v27 = vmul.f32 %v626_v3, %v103_v8  ;;  %v633_v28 = vunpack.c.l.bf16 %v730_v17  ;;  %v634_v29 = vunpack.c.h.bf16 %v730_v17 }
  0x17   :  { %v112_v31 = vadd.f32 %v110_v13, %v82_v5  ;;  %v113_v32 = vadd.f32 %v111_v14, %v83_v6  ;;  %v132_v33 = vmul.f32 0.036271986, %v629_v15  ;;  %v133_v34 = vmul.f32 0.036271986, %v630_v16  ;;  %v734_v5 = vld [vmem:[%s883_s1 + $0x30] sm:$0xff]  }
  0x18   :  { %v116_v35 = vadd.f32 %v114_v20, %v86_v9  ;;  %v117_v36 = vadd.f32 %v115_v21, %v87_v10  ;;  %v134_v37 = vmul.f32 0.036271986, %v633_v28  ;;  %v135_v38 = vmul.f32 0.036271986, %v634_v29 }
  0x19   :  { %v140_v39 = vmul.f32 %v629_v15, %v132_v33  ;;  %v141_v40 = vmul.f32 %v630_v16, %v133_v34  ;;  %v637_v41 = vunpack.c.l.bf16 %v731_v30  ;;  %v638_v42 = vunpack.c.h.bf16 %v731_v30 }
  0x1a   :  { %v120_v44 = vadd.f32 %v118_v26, %v90_v18  ;;  %v121_v45 = vadd.f32 %v119_v27, %v91_v19  ;;  %v144_v46 = vmul.f32 %v633_v28, %v134_v37  ;;  %v145_v47 = vmul.f32 %v634_v29, %v135_v38  ;;  %v735_v18 = vld [vmem:[%s882_s0 + $0x38] sm:$0xff]  }
  0x1b   :  { %v136_v48 = vadd.f32 %v132_v33, %v106_v22  ;;  %v137_v49 = vadd.f32 %v133_v34, %v107_v23  ;;  %v138_v50 = vadd.f32 %v134_v37, %v108_v24  ;;  %v139_v51 = vadd.f32 %v135_v38, %v109_v25 }
  0x1c   :  { %v148_v52 = vmul.f32 %v633_v28, %v132_v33  ;;  %v149_v53 = vmul.f32 %v634_v29, %v133_v34  ;;  %v641_v54 = vunpack.c.l.bf16 %v732_v43  ;;  %v642_v55 = vunpack.c.h.bf16 %v732_v43 }
  0x1d   :  { %v142_v57 = vadd.f32 %v140_v39, %v112_v31  ;;  %v143_v58 = vadd.f32 %v141_v40, %v113_v32  ;;  %v162_v59 = vmul.f32 0.07064818, %v637_v41  ;;  %v163_v60 = vmul.f32 0.07064818, %v638_v42  ;;  %v736_v31 = vld [vmem:[%s883_s1 + $0x38] sm:$0xff]  }
  0x1e   :  { %v146_v61 = vadd.f32 %v144_v46, %v116_v35  ;;  %v147_v62 = vadd.f32 %v145_v47, %v117_v36  ;;  %v164_v63 = vmul.f32 0.07064818, %v641_v54  ;;  %v165_v0 = vmul.f32 0.07064818, %v642_v55 }
  0x1f   :  { %v170_v1 = vmul.f32 %v637_v41, %v162_v59  ;;  %v171_v2 = vmul.f32 %v638_v42, %v163_v60  ;;  %v645_v3 = vunpack.c.l.bf16 %v733_v56  ;;  %v646_v4 = vunpack.c.h.bf16 %v733_v56 }
  0x20   :  { %v150_v6 = vadd.f32 %v148_v52, %v120_v44  ;;  %v151_v7 = vadd.f32 %v149_v53, %v121_v45  ;;  %v174_v8 = vmul.f32 %v641_v54, %v164_v63  ;;  %v175_v9 = vmul.f32 %v642_v55, %v165_v0  ;;  %v737_v44 = vld [vmem:[%s882_s0 + $0x40] sm:$0xff]  }
  0x21   :  { %v166_v10 = vadd.f32 %v162_v59, %v136_v48  ;;  %v167_v11 = vadd.f32 %v163_v60, %v137_v49  ;;  %v168_v12 = vadd.f32 %v164_v63, %v138_v50  ;;  %v169_v13 = vadd.f32 %v165_v0, %v139_v51 }
  0x22   :  { %v178_v14 = vmul.f32 %v641_v54, %v162_v59  ;;  %v179_v15 = vmul.f32 %v642_v55, %v163_v60  ;;  %v649_v16 = vunpack.c.l.bf16 %v734_v5  ;;  %v650_v17 = vunpack.c.h.bf16 %v734_v5 }
  0x23   :  { %v172_v19 = vadd.f32 %v170_v1, %v142_v57  ;;  %v173_v20 = vadd.f32 %v171_v2, %v143_v58  ;;  %v192_v21 = vmul.f32 0.0882289, %v645_v3  ;;  %v193_v22 = vmul.f32 0.0882289, %v646_v4  ;;  %v738_v57 = vld [vmem:[%s883_s1 + $0x40] sm:$0xff]  }
  0x24   :  { %v176_v23 = vadd.f32 %v174_v8, %v146_v61  ;;  %v177_v24 = vadd.f32 %v175_v9, %v147_v62  ;;  %v194_v25 = vmul.f32 0.0882289, %v649_v16  ;;  %v195_v26 = vmul.f32 0.0882289, %v650_v17 }
  0x25   :  { %v200_v27 = vmul.f32 %v645_v3, %v192_v21  ;;  %v201_v28 = vmul.f32 %v646_v4, %v193_v22  ;;  %v653_v29 = vunpack.c.l.bf16 %v735_v18  ;;  %v654_v30 = vunpack.c.h.bf16 %v735_v18 }
  0x26   :  { %v180_v32 = vadd.f32 %v178_v14, %v150_v6  ;;  %v181_v33 = vadd.f32 %v179_v15, %v151_v7  ;;  %v204_v34 = vmul.f32 %v649_v16, %v194_v25  ;;  %v205_v35 = vmul.f32 %v650_v17, %v195_v26  ;;  %v739_v6 = vld [vmem:[%s882_s0 + $0x48] sm:$0xff]  }
  0x27   :  { %v196_v36 = vadd.f32 %v192_v21, %v166_v10  ;;  %v197_v37 = vadd.f32 %v193_v22, %v167_v11  ;;  %v198_v38 = vadd.f32 %v194_v25, %v168_v12  ;;  %v199_v39 = vadd.f32 %v195_v26, %v169_v13 }
  0x28   :  { %v208_v40 = vmul.f32 %v649_v16, %v192_v21  ;;  %v209_v41 = vmul.f32 %v650_v17, %v193_v22  ;;  %v657_v42 = vunpack.c.l.bf16 %v736_v31  ;;  %v658_v43 = vunpack.c.h.bf16 %v736_v31 }
  0x29   :  { %v202_v45 = vadd.f32 %v200_v27, %v172_v19  ;;  %v203_v46 = vadd.f32 %v201_v28, %v173_v20  ;;  %v222_v47 = vmul.f32 0.07064818, %v653_v29  ;;  %v223_v48 = vmul.f32 0.07064818, %v654_v30  ;;  %v740_v19 = vld [vmem:[%s883_s1 + $0x48] sm:$0xff]  }
  0x2a   :  { %v206_v49 = vadd.f32 %v204_v34, %v176_v23  ;;  %v207_v50 = vadd.f32 %v205_v35, %v177_v24  ;;  %v224_v51 = vmul.f32 0.07064818, %v657_v42  ;;  %v225_v52 = vmul.f32 0.07064818, %v658_v43 }
  0x2b   :  { %v230_v53 = vmul.f32 %v653_v29, %v222_v47  ;;  %v231_v54 = vmul.f32 %v654_v30, %v223_v48  ;;  %v661_v55 = vunpack.c.l.bf16 %v737_v44  ;;  %v662_v56 = vunpack.c.h.bf16 %v737_v44 }
  0x2c   :  { %v210_v58 = vadd.f32 %v208_v40, %v180_v32  ;;  %v211_v59 = vadd.f32 %v209_v41, %v181_v33  ;;  %v234_v60 = vmul.f32 %v657_v42, %v224_v51  ;;  %v235_v61 = vmul.f32 %v658_v43, %v225_v52  ;;  %v741_v32 = vld [vmem:[%s882_s0 + $0x50] sm:$0xff]  }
  0x2d   :  { %v226_v62 = vadd.f32 %v222_v47, %v196_v36  ;;  %v227_v63 = vadd.f32 %v223_v48, %v197_v37  ;;  %v228_v0 = vadd.f32 %v224_v51, %v198_v38  ;;  %v229_v1 = vadd.f32 %v225_v52, %v199_v39 }
  0x2e   :  { %v238_v2 = vmul.f32 %v657_v42, %v222_v47  ;;  %v239_v3 = vmul.f32 %v658_v43, %v223_v48  ;;  %v665_v4 = vunpack.c.l.bf16 %v738_v57  ;;  %v666_v5 = vunpack.c.h.bf16 %v738_v57 }
  0x2f   :  { %v232_v7 = vadd.f32 %v230_v53, %v202_v45  ;;  %v233_v8 = vadd.f32 %v231_v54, %v203_v46  ;;  %v252_v9 = vmul.f32 0.04529823, %v661_v55  ;;  %v253_v10 = vmul.f32 0.04529823, %v662_v56  ;;  %v742_v45 = vld [vmem:[%s883_s1 + $0x50] sm:$0xff]  }
  0x30   :  { %v236_v11 = vadd.f32 %v234_v60, %v206_v49  ;;  %v237_v12 = vadd.f32 %v235_v61, %v207_v50  ;;  %v254_v13 = vmul.f32 0.04529823, %v665_v4  ;;  %v255_v14 = vmul.f32 0.04529823, %v666_v5 }
  0x31   :  { %v260_v15 = vmul.f32 %v661_v55, %v252_v9  ;;  %v261_v16 = vmul.f32 %v662_v56, %v253_v10  ;;  %v669_v17 = vunpack.c.l.bf16 %v739_v6  ;;  %v670_v18 = vunpack.c.h.bf16 %v739_v6 }
  0x32   :  { %v240_v20 = vadd.f32 %v238_v2, %v210_v58  ;;  %v241_v21 = vadd.f32 %v239_v3, %v211_v59  ;;  %v264_v22 = vmul.f32 %v665_v4, %v254_v13  ;;  %v265_v23 = vmul.f32 %v666_v5, %v255_v14  ;;  %v743_v58 = vld [vmem:[%s882_s0 + $0x58] sm:$0xff]  }
  0x33   :  { %v256_v24 = vadd.f32 %v252_v9, %v226_v62  ;;  %v257_v25 = vadd.f32 %v253_v10, %v227_v63  ;;  %v258_v26 = vadd.f32 %v254_v13, %v228_v0  ;;  %v259_v27 = vadd.f32 %v255_v14, %v229_v1 }
  0x34   :  { %v268_v28 = vmul.f32 %v665_v4, %v252_v9  ;;  %v269_v29 = vmul.f32 %v666_v5, %v253_v10  ;;  %v673_v30 = vunpack.c.l.bf16 %v740_v19  ;;  %v674_v31 = vunpack.c.h.bf16 %v740_v19 }
  0x35   :  { %v262_v33 = vadd.f32 %v260_v15, %v232_v7  ;;  %v263_v34 = vadd.f32 %v261_v16, %v233_v8  ;;  %v282_v35 = vmul.f32 0.0882289, %v669_v17  ;;  %v283_v36 = vmul.f32 0.0882289, %v670_v18  ;;  %v744_v7 = vld [vmem:[%s883_s1 + $0x58] sm:$0xff]  }
  0x36   :  { %v266_v37 = vadd.f32 %v264_v22, %v236_v11  ;;  %v267_v38 = vadd.f32 %v265_v23, %v237_v12  ;;  %v284_v39 = vmul.f32 0.0882289, %v673_v30  ;;  %v285_v40 = vmul.f32 0.0882289, %v674_v31 }
  0x37   :  { %v290_v41 = vmul.f32 %v669_v17, %v282_v35  ;;  %v291_v42 = vmul.f32 %v670_v18, %v283_v36  ;;  %v677_v43 = vunpack.c.l.bf16 %v741_v32  ;;  %v678_v44 = vunpack.c.h.bf16 %v741_v32 }
  0x38   :  { %v270_v46 = vadd.f32 %v268_v28, %v240_v20  ;;  %v271_v47 = vadd.f32 %v269_v29, %v241_v21  ;;  %v294_v48 = vmul.f32 %v673_v30, %v284_v39  ;;  %v295_v49 = vmul.f32 %v674_v31, %v285_v40  ;;  %v745_v20 = vld [vmem:[%s882_s0 + $0x60] sm:$0xff]  }
  0x39   :  { %v286_v50 = vadd.f32 %v282_v35, %v256_v24  ;;  %v287_v51 = vadd.f32 %v283_v36, %v257_v25  ;;  %v288_v52 = vadd.f32 %v284_v39, %v258_v26  ;;  %v289_v53 = vadd.f32 %v285_v40, %v259_v27 }
  0x3a   :  { %v298_v54 = vmul.f32 %v673_v30, %v282_v35  ;;  %v299_v55 = vmul.f32 %v674_v31, %v283_v36  ;;  %v681_v56 = vunpack.c.l.bf16 %v742_v45  ;;  %v682_v57 = vunpack.c.h.bf16 %v742_v45 }
  0x3b   :  { %v292_v59 = vadd.f32 %v290_v41, %v262_v33  ;;  %v293_v60 = vadd.f32 %v291_v42, %v263_v34  ;;  %v312_v61 = vmul.f32 0.11018457, %v677_v43  ;;  %v313_v62 = vmul.f32 0.11018457, %v678_v44  ;;  %v746_v33 = vld [vmem:[%s883_s1 + $0x60] sm:$0xff]  }
  0x3c   :  { %v296_v63 = vadd.f32 %v294_v48, %v266_v37  ;;  %v297_v0 = vadd.f32 %v295_v49, %v267_v38  ;;  %v314_v1 = vmul.f32 0.11018457, %v681_v56  ;;  %v315_v2 = vmul.f32 0.11018457, %v682_v57 }
  0x3d   :  { %v320_v3 = vmul.f32 %v677_v43, %v312_v61  ;;  %v321_v4 = vmul.f32 %v678_v44, %v313_v62  ;;  %v685_v5 = vunpack.c.l.bf16 %v743_v58  ;;  %v686_v6 = vunpack.c.h.bf16 %v743_v58 }
  0x3e   :  { %v300_v8 = vadd.f32 %v298_v54, %v270_v46  ;;  %v301_v9 = vadd.f32 %v299_v55, %v271_v47  ;;  %v324_v10 = vmul.f32 %v681_v56, %v314_v1  ;;  %v325_v11 = vmul.f32 %v682_v57, %v315_v2  ;;  %v747_v46 = vld [vmem:[%s882_s0 + $0x68] sm:$0xff]  }
  0x3f   :  { %v316_v12 = vadd.f32 %v312_v61, %v286_v50  ;;  %v317_v13 = vadd.f32 %v313_v62, %v287_v51  ;;  %v318_v14 = vadd.f32 %v314_v1, %v288_v52  ;;  %v319_v15 = vadd.f32 %v315_v2, %v289_v53 }
  0x40   :  { %v328_v16 = vmul.f32 %v681_v56, %v312_v61  ;;  %v329_v17 = vmul.f32 %v682_v57, %v313_v62  ;;  %v689_v18 = vunpack.c.l.bf16 %v744_v7  ;;  %v690_v19 = vunpack.c.h.bf16 %v744_v7 }
  0x41   :  { %v322_v21 = vadd.f32 %v320_v3, %v292_v59  ;;  %v323_v22 = vadd.f32 %v321_v4, %v293_v60  ;;  %v342_v23 = vmul.f32 0.0882289, %v685_v5  ;;  %v343_v24 = vmul.f32 0.0882289, %v686_v6  ;;  %v748_v59 = vld [vmem:[%s883_s1 + $0x68] sm:$0xff]  }
  0x42   :  { %v326_v25 = vadd.f32 %v324_v10, %v296_v63  ;;  %v327_v26 = vadd.f32 %v325_v11, %v297_v0  ;;  %v344_v27 = vmul.f32 0.0882289, %v689_v18  ;;  %v345_v28 = vmul.f32 0.0882289, %v690_v19 }
  0x43   :  { %v350_v29 = vmul.f32 %v685_v5, %v342_v23  ;;  %v351_v30 = vmul.f32 %v686_v6, %v343_v24  ;;  %v693_v31 = vunpack.c.l.bf16 %v745_v20  ;;  %v694_v32 = vunpack.c.h.bf16 %v745_v20 }
  0x44   :  { %v330_v34 = vadd.f32 %v328_v16, %v300_v8  ;;  %v331_v35 = vadd.f32 %v329_v17, %v301_v9  ;;  %v354_v36 = vmul.f32 %v689_v18, %v344_v27  ;;  %v355_v37 = vmul.f32 %v690_v19, %v345_v28  ;;  %v749_v8 = vld [vmem:[%s882_s0 + $0x70] sm:$0xff]  }
  0x45   :  { %v346_v38 = vadd.f32 %v342_v23, %v316_v12  ;;  %v347_v39 = vadd.f32 %v343_v24, %v317_v13  ;;  %v348_v40 = vadd.f32 %v344_v27, %v318_v14  ;;  %v349_v41 = vadd.f32 %v345_v28, %v319_v15 }
  0x46   :  { %v358_v42 = vmul.f32 %v689_v18, %v342_v23  ;;  %v359_v43 = vmul.f32 %v690_v19, %v343_v24  ;;  %v697_v44 = vunpack.c.l.bf16 %v746_v33  ;;  %v698_v45 = vunpack.c.h.bf16 %v746_v33 }
  0x47   :  { %v352_v47 = vadd.f32 %v350_v29, %v322_v21  ;;  %v353_v48 = vadd.f32 %v351_v30, %v323_v22  ;;  %v372_v49 = vmul.f32 0.036271986, %v693_v31  ;;  %v373_v50 = vmul.f32 0.036271986, %v694_v32  ;;  %v750_v21 = vld [vmem:[%s883_s1 + $0x70] sm:$0xff]  }
  0x48   :  { %v356_v51 = vadd.f32 %v354_v36, %v326_v25  ;;  %v357_v52 = vadd.f32 %v355_v37, %v327_v26  ;;  %v374_v53 = vmul.f32 0.036271986, %v697_v44  ;;  %v375_v54 = vmul.f32 0.036271986, %v698_v45 }
  0x49   :  { %v380_v55 = vmul.f32 %v693_v31, %v372_v49  ;;  %v381_v56 = vmul.f32 %v694_v32, %v373_v50  ;;  %v701_v57 = vunpack.c.l.bf16 %v747_v46  ;;  %v702_v58 = vunpack.c.h.bf16 %v747_v46 }
  0x4a   :  { %v360_v60 = vadd.f32 %v358_v42, %v330_v34  ;;  %v361_v61 = vadd.f32 %v359_v43, %v331_v35  ;;  %v384_v62 = vmul.f32 %v697_v44, %v374_v53  ;;  %v385_v63 = vmul.f32 %v698_v45, %v375_v54  ;;  %v751_v34 = vld [vmem:[%s882_s0 + $0x78] sm:$0xff]  }
  0x4b   :  { %v376_v0 = vadd.f32 %v372_v49, %v346_v38  ;;  %v377_v1 = vadd.f32 %v373_v50, %v347_v39  ;;  %v378_v2 = vadd.f32 %v374_v53, %v348_v40  ;;  %v379_v3 = vadd.f32 %v375_v54, %v349_v41 }
  0x4c   :  { %v388_v4 = vmul.f32 %v697_v44, %v372_v49  ;;  %v389_v5 = vmul.f32 %v698_v45, %v373_v50  ;;  %v705_v6 = vunpack.c.l.bf16 %v748_v59  ;;  %v706_v7 = vunpack.c.h.bf16 %v748_v59 }
  0x4d   :  { %v382_v9 = vadd.f32 %v380_v55, %v352_v47  ;;  %v383_v10 = vadd.f32 %v381_v56, %v353_v48  ;;  %v402_v11 = vmul.f32 0.07064818, %v701_v57  ;;  %v403_v12 = vmul.f32 0.07064818, %v702_v58  ;;  %v752_v47 = vld [vmem:[%s883_s1 + $0x78] sm:$0xff]  }
  0x4e   :  { %v386_v13 = vadd.f32 %v384_v62, %v356_v51  ;;  %v387_v14 = vadd.f32 %v385_v63, %v357_v52  ;;  %v404_v15 = vmul.f32 0.07064818, %v705_v6  ;;  %v405_v16 = vmul.f32 0.07064818, %v706_v7 }
  0x4f   :  { %v410_v17 = vmul.f32 %v701_v57, %v402_v11  ;;  %v411_v18 = vmul.f32 %v702_v58, %v403_v12  ;;  %v709_v19 = vunpack.c.l.bf16 %v749_v8  ;;  %v710_v20 = vunpack.c.h.bf16 %v749_v8 }
  0x50   :  { %v390_v22 = vadd.f32 %v388_v4, %v360_v60  ;;  %v391_v23 = vadd.f32 %v389_v5, %v361_v61  ;;  %v414_v24 = vmul.f32 %v705_v6, %v404_v15  ;;  %v415_v25 = vmul.f32 %v706_v7, %v405_v16 }
  0x51   :  { %v406_v26 = vadd.f32 %v402_v11, %v376_v0  ;;  %v407_v27 = vadd.f32 %v403_v12, %v377_v1  ;;  %v408_v28 = vadd.f32 %v404_v15, %v378_v2  ;;  %v409_v29 = vadd.f32 %v405_v16, %v379_v3 }
  0x52   :  { %v418_v30 = vmul.f32 %v705_v6, %v402_v11  ;;  %v419_v31 = vmul.f32 %v706_v7, %v403_v12  ;;  %v713_v32 = vunpack.c.l.bf16 %v750_v21  ;;  %v714_v33 = vunpack.c.h.bf16 %v750_v21 }
  0x53   :  { %v412_v35 = vadd.f32 %v410_v17, %v382_v9  ;;  %v413_v36 = vadd.f32 %v411_v18, %v383_v10  ;;  %v432_v37 = vmul.f32 0.0882289, %v709_v19  ;;  %v433_v38 = vmul.f32 0.0882289, %v710_v20 }
  0x54   :  { %v416_v39 = vadd.f32 %v414_v24, %v386_v13  ;;  %v417_v40 = vadd.f32 %v415_v25, %v387_v14  ;;  %v434_v41 = vmul.f32 0.0882289, %v713_v32  ;;  %v435_v42 = vmul.f32 0.0882289, %v714_v33 }
  0x55   :  { %v440_v43 = vmul.f32 %v709_v19, %v432_v37  ;;  %v441_v44 = vmul.f32 %v710_v20, %v433_v38  ;;  %v717_v45 = vunpack.c.l.bf16 %v751_v34  ;;  %v718_v46 = vunpack.c.h.bf16 %v751_v34 }
  0x56   :  { %v420_v48 = vadd.f32 %v418_v30, %v390_v22  ;;  %v421_v49 = vadd.f32 %v419_v31, %v391_v23  ;;  %v444_v50 = vmul.f32 %v713_v32, %v434_v41  ;;  %v445_v51 = vmul.f32 %v714_v33, %v435_v42 }
  0x57   :  { %v436_v52 = vadd.f32 %v432_v37, %v406_v26  ;;  %v437_v53 = vadd.f32 %v433_v38, %v407_v27  ;;  %v438_v54 = vadd.f32 %v434_v41, %v408_v28  ;;  %v439_v55 = vadd.f32 %v435_v42, %v409_v29 }
  0x58   :  { %v442_v56 = vadd.f32 %v440_v43, %v412_v35  ;;  %v443_v57 = vadd.f32 %v441_v44, %v413_v36  ;;  %v721_v58 = vunpack.c.l.bf16 %v752_v47  ;;  %v722_v59 = vunpack.c.h.bf16 %v752_v47 }
  0x59   :  { %v448_v60 = vmul.f32 %v713_v32, %v432_v37  ;;  %v449_v61 = vmul.f32 %v714_v33, %v433_v38  ;;  %v462_v62 = vmul.f32 0.07064818, %v717_v45  ;;  %v463_v63 = vmul.f32 0.07064818, %v718_v46 }
  0x5a   :  { %v446_v0 = vadd.f32 %v444_v50, %v416_v39  ;;  %v447_v1 = vadd.f32 %v445_v51, %v417_v40  ;;  %v464_v2 = vmul.f32 0.07064818, %v721_v58  ;;  %v465_v3 = vmul.f32 0.07064818, %v722_v59 }
  0x5b   :  { %v466_v4 = vadd.f32 %v462_v62, %v436_v52  ;;  %v467_v5 = vadd.f32 %v463_v63, %v437_v53  ;;  %v470_v6 = vmul.f32 %v717_v45, %v462_v62  ;;  %v471_v7 = vmul.f32 %v718_v46, %v463_v63 }
  0x5c   :  { %v468_v8 = vadd.f32 %v464_v2, %v438_v54  ;;  %v469_v9 = vadd.f32 %v465_v3, %v439_v55  ;;  %v474_v10 = vmul.f32 %v721_v58, %v464_v2  ;;  %v475_v11 = vmul.f32 %v722_v59, %v465_v3  ;;  %v518_v55 = vld [vmem:[%s884_s2] sm:$0xff] }
  0x5d   :  { %v450_v12 = vadd.f32 %v448_v60, %v420_v48  ;;  %v472_v13 = vadd.f32 %v470_v6, %v442_v56  ;;  %v473_v14 = vadd.f32 %v471_v7, %v443_v57  ;;  %v478_v15 = vmul.f32 %v721_v58, %v462_v62  ;;  %v519_v58 = vld [vmem:[%s884_s2 + $0x8] sm:$0xff] }
  0x5e   :  { %v476_v16 = vadd.f32 %v474_v10, %v446_v0  ;;  %v477_v17 = vadd.f32 %v475_v11, %v447_v1  ;;  %v482_v18 = vmul.f32 %v466_v4, %v466_v4  ;;  %v483_v19 = vmul.f32 %v467_v5, %v467_v5 }
  0x5f   :  { %v484_v20 = vmul.f32 %v468_v8, %v468_v8  ;;  %v485_v21 = vmul.f32 %v469_v9, %v469_v9  ;;  %v451_v22 = vadd.f32 %v449_v61, %v421_v49  ;;  %v479_v23 = vmul.f32 %v722_v59, %v463_v63 }
  0x60   :  { %v504_v24 = vsub.f32 %v472_v13, %v482_v18  ;;  %v505_v25 = vsub.f32 %v473_v14, %v483_v19  ;;  %v480_v30 = vadd.f32 %v478_v15, %v450_v12  ;;  %v486_v31 = vmul.f32 %v468_v8, %v466_v4 }
  0x61   :  { %v500_v26 = vadd.f32 %v484_v20, %v482_v18  ;;  %v501_v27 = vadd.f32 %v485_v21, %v483_v19  ;;  %v506_v28 = vsub.f32 %v476_v16, %v484_v20  ;;  %v507_v29 = vsub.f32 %v477_v17, %v485_v21 }
  0x62   :  { %v481_v36 = vadd.f32 %v479_v23, %v451_v22  ;;  %v487_v37 = vmul.f32 %v469_v9, %v467_v5  ;;  %v492_v40 = vsub.f32 %v480_v30, %v486_v31  ;;  %v488_v44 = vmul.f32 2.0, %v486_v31 }
  0x63   :  { %v502_v32 = vadd.f32 0.0001, %v500_v26  ;;  %v503_v33 = vadd.f32 0.0001, %v501_v27  ;;  %v508_v34 = vadd.f32 %v506_v28, %v504_v24  ;;  %v509_v35 = vadd.f32 %v507_v29, %v505_v25 }
  0x64   :  { %v493_v43 = vsub.f32 %v481_v36, %v487_v37  ;;  %v494_v45 = vmul.f32 2.0, %v492_v40  ;;  %v489_v46 = vmul.f32 2.0, %v487_v37  ;;  %v490_v48 = vadd.f32 0.0001, %v488_v44 }
  0x65   :  { %v510_v38 = vadd.f32 0.0009, %v508_v34  ;;  %v511_v39 = vadd.f32 0.0009, %v509_v35 }
  0x66   :  { %v495_v47 = vmul.f32 2.0, %v493_v43  ;;  %v496_v49 = vadd.f32 0.0009, %v494_v45  ;;  %v491_v50 = vadd.f32 0.0001, %v489_v46 }
  0x67   :  { %v512_v41 = vmul.f32 %v510_v38, %v502_v32  ;;  %v513_v42 = vmul.f32 %v511_v39, %v503_v33 }
  0x68   :  { %v497_v51 = vadd.f32 0.0009, %v495_v47  ;;  %v498_v52 = vmul.f32 %v496_v49, %v490_v48 }
  0x69   :  { %753 = vrcp.f32 %v512_v41 }
  0x6a   :  { %755 = vrcp.f32 %v513_v42  ;;  %v499_v53 = vmul.f32 %v497_v51, %v491_v50 }
  0x76   :  { %v754_v54 = vpop.eup %753 }
  0x77   :  { %v756_v56 = vpop.eup %755  ;;  %v516_v57 = vmul.f32 %v754_v54, %v498_v52 }
  0x78   :  { %v517_v59 = vmul.f32 %v756_v56, %v499_v53 }
  0x79   :  { %v520_v60 = vmul.f32 %v518_v55, %v516_v57 }
  0x7a   :  { %v521_v61 = vmul.f32 %v519_v58, %v517_v59 }
  0x7c   :  { %v522_v62 = vadd.f32 %v521_v61, %v520_v60 }
  0x7e   :  { %v523_v63 = vrot.slane %v522_v62, 4 }
  0x80   :  { %v524_v0 = vadd.f32 %v523_v63, %v522_v62 }
  0x82   :  { %v525_v1 = vrot.slane %v524_v0, 2 }
  0x84   :  { %v526_v2 = vadd.f32 %v525_v1, %v524_v0 }
  0x86   :  { %v527_v3 = vrot.slane %v526_v2, 1 }
  0x88   :  { %v528_v4 = vadd.f32 %v527_v3, %v526_v2 }
  0x8a   :  { %530 = vst [vmem:[%s885_s3] sm:$0x1] %v528_v4 }

</bundles_post_ra>
